<compile_context>
chip_gen: v5e
topology: v5e:2x2
jax: 0.10.0
libtpu: 0.0.40
codegen_flags: <defaults>
</compile_context>

<pallas_src>
from functools import partial

import numpy as np
import jax
import jax.numpy as jnp
from jax.experimental import pallas as pl
from jax.experimental.pallas import tpu as pltpu


# ----------------------------------------------------------------------------
# Pallas kernel: fused weighted cost-matrix combination (lane-dense layout)
# ----------------------------------------------------------------------------
_LANE_WIDTH = 512       # multiple of 128 -> fully unmasked vector stores
_MAX_TILE_ROWS = 1024   # 1024 x 512 f32 = 2 MiB per tile; safe on v5e/v6e/v7x


def _round_up(x: int, m: int) -> int:
    return ((x + m - 1) // m) * m


def _cost_kernel(cc: float, cg: float, center_ref, giou_ref, out_ref):
    # final = cc * center + cg * (-giou).  Cast to f32 inside the kernel so the
    # wrapper never materializes extra f32 copies of the inputs in HBM (and so
    # v5e, which has no bf16 VPU, always computes in f32).
    c = center_ref[...].astype(jnp.float32)
    g = giou_ref[...].astype(jnp.float32)
    out_ref[...] = cc * c - cg * g


def _make_cost_matrix_fn(cost_center: float, cost_giou: float):
    cc = float(cost_center)
    cg = float(cost_giou)
    kernel = partial(_cost_kernel, cc, cg)

    @jax.jit
    def cost_matrix(center_dist: jax.Array, gious: jax.Array) -> jax.Array:
        assert center_dist.shape == gious.shape
        B, Q, G = center_dist.shape
        n = B * Q * G

        # Lane-dense layout: flatten and view as (rows, 512) so the (often
        # tiny) ngt axis never lands on the 128-wide lane axis.  Pad so the
        # array is an exact multiple of the tile, keeping every block full.
        rows_raw = pl.cdiv(n, _LANE_WIDTH)
        tile_rows = min(_MAX_TILE_ROWS, _round_up(rows_raw, 8))
        rows = _round_up(rows_raw, tile_rows)
        n_pad = rows * _LANE_WIDTH

        def to_2d(x):
            flat = x.reshape(-1)
            if n_pad != n:
                flat = jnp.pad(flat, (0, n_pad - n))
            return flat.reshape(rows, _LANE_WIDTH)

        c2 = to_2d(center_dist)
        g2 = to_2d(gious)

        grid = (rows // tile_rows,)

        out2 = pl.pallas_call(
            kernel,
            out_shape=jax.ShapeDtypeStruct((rows, _LANE_WIDTH), jnp.float32),
            grid=grid,
            in_specs=[
                pl.BlockSpec((tile_rows, _LANE_WIDTH), lambda r: (r, 0)),
                pl.BlockSpec((tile_rows, _LANE_WIDTH), lambda r: (r, 0)),
            ],
            out_specs=pl.BlockSpec((tile_rows, _LANE_WIDTH), lambda r: (r, 0)),
            compiler_params=pltpu.CompilerParams(
                # Row-tile axis is independent -> shards across v7x's 2 TCs.
                dimension_semantics=("parallel",),
            ),
        )(c2, g2)

        # Keep f32 output: bf16 rounding could flip near-ties in the Hungarian
        # assignment relative to the torch/scipy reference.
        return out2.reshape(-1)[:n].reshape(B, Q, G)

    return cost_matrix


# ----------------------------------------------------------------------------
# Host-side Hungarian matching (replacement for scipy.linear_sum_assignment)
# ----------------------------------------------------------------------------
def _hungarian_square(cost: np.ndarray):
    """O(n^3) Jonker-Volgenant style assignment on a square cost matrix."""
    n = cost.shape[0]
    INF = np.inf
    u = np.zeros(n + 1)
    v = np.zeros(n + 1)
    p = np.zeros(n + 1, dtype=np.int64)    # p[j]: 1-indexed row matched to col j
    way = np.zeros(n + 1, dtype=np.int64)
    for i in range(1, n + 1):
        p[0] = i
        j0 = 0
        minv = np.full(n + 1, INF)
        used = np.zeros(n + 1, dtype=bool)
        while True:
            used[j0] = True
            i0 = p[j0]
            delta = INF
            j1 = 0
            for j in range(1, n + 1):
                if not used[j]:
                    cur = cost[i0 - 1, j - 1] - u[i0] - v[j]
                    if cur < minv[j]:
                        minv[j] = cur
                        way[j] = j0
                    if minv[j] < delta:
                        delta = minv[j]
                        j1 = j
            for j in range(n + 1):
                if used[j]:
                    u[p[j]] += delta
                    v[j] -= delta
                else:
                    minv[j] -= delta
            j0 = j1
            if p[j0] == 0:
                break
        while True:
            j1 = way[j0]
            p[j0] = p[j1]
            j0 = j1
            if j0 == 0:
                break
    rows = p[1:] - 1
    cols = np.arange(n, dtype=np.int64)
    return rows, cols


def _linear_sum_assignment(cost: np.ndarray):
    """Rectangular min-cost assignment matching scipy's semantics."""
    # NOTE: like scipy, assumes finite costs; inf/NaN (degenerate gious) would
    # need an explicit guard before padding with cost.max() + 1.
    cost = np.asarray(cost, dtype=np.float64)
    nr, nc = cost.shape
    pad_val = (cost.max() if cost.size else 0.0) + 1.0
    if nc <= nr:
        cost_sq = np.concatenate(
            [cost, np.full((nr, nr - nc), pad_val, dtype=np.float64)], axis=1
        )
        rows, cols = _hungarian_square(cost_sq)
        keep = cols < nc
    else:
        cost_sq = np.concatenate(
            [cost, np.full((nc - nr, nc), pad_val, dtype=np.float64)], axis=0
        )
        rows, cols = _hungarian_square(cost_sq)
        keep = rows < nr
    rows, cols = rows[keep], cols[keep]
    order = np.argsort(rows, kind="stable")
    return rows[order].astype(np.int64), cols[order].astype(np.int64)


# ----------------------------------------------------------------------------
# Matcher (JAX / Pallas port)
# ----------------------------------------------------------------------------
class Matcher:
    def __init__(self, cost_objectness, cost_giou, cost_center):
        self.cost_objectness = cost_objectness  # unused in forward (as in original)
        self.cost_giou = cost_giou
        self.cost_center = cost_center
        self._cost_matrix = _make_cost_matrix_fn(cost_center, cost_giou)

    def __call__(self, outputs, targets):
        center_dist = outputs["center_dist"]           # (B, nprop, ngt)
        gious = outputs["gious"]                       # (B, nprop, ngt)
        batchsize, nprop, _ = center_dist.shape
        nactual_gt = np.asarray(targets["nactual_gt"])

        # Hot path on TPU via the jitted Pallas kernel; np.asarray synchronizes
        # (device -> host), mirroring the original .cpu().numpy().
        final_cost = np.asarray(self._cost_matrix(center_dist, gious))

        assignments = []
        per_prop_gt_inds = np.zeros([batchsize, nprop], dtype=np.int64)
        proposal_matched_mask = np.zeros([batchsize, nprop], dtype=np.float32)
        for b in range(batchsize):
            assign = []
            if nactual_gt[b] > 0:
                rows, cols = _linear_sum_assignment(
                    final_cost[b, :, : nactual_gt[b]]
                )
                # TODO(synk): original returns int64 torch tensors; JAX default
                # is int32, so device-side assignments are int32 here.
                assign = [
                    jnp.asarray(rows, dtype=jnp.int32),
                    jnp.asarray(cols, dtype=jnp.int32),
                ]
                per_prop_gt_inds[b, rows] = cols
                proposal_matched_mask[b, rows] = 1.0
            assignments.append(assign)
        return {
            "assignments": assignments,
            "per_prop_gt_inds": per_prop_gt_inds,
            "proposal_matched_mask": proposal_matched_mask,
        }


# ----------------------------------------------------------------------------
# Demo
# ----------------------------------------------------------------------------
if __name__ == "__main__":
    key = jax.random.PRNGKey(0)
    B, NPROP, NGT = 2, 16, 8

    k1, k2, k3 = jax.random.split(key, 3)
    center_dist = jax.random.uniform(k1, (B, NPROP, NGT), dtype=jnp.float32) * 2.0
    gious = jax.random.uniform(k2, (B, NPROP, NGT), dtype=jnp.float32) * 2.0 - 1.0
    gt_centers = jax.random.uniform(k3, (B, NGT, 3), dtype=jnp.float32)
    nactual_gt = np.array([5, 3], dtype=np.int64)

    outputs = {"center_dist": center_dist, "gious": gious}
    targets = {"gt_box_centers_normalized": gt_centers, "nactual_gt": nactual_gt}

    matcher = Matcher(cost_objectness=1.0, cost_giou=2.0, cost_center=0.5)

    # Run the Pallas kernel directly once and block on the result.
    final_cost_dev = matcher._cost_matrix(center_dist, gious)
    jax.block_until_ready(final_cost_dev)

    # Numerical check against the plain-JAX reference of the fused op.
    ref = 0.5 * center_dist + 2.0 * (-gious)
    np.testing.assert_allclose(
        np.asarray(final_cost_dev), np.asarray(ref), rtol=1e-6, atol=1e-6
    )

    # Full forward pass (kernel + host Hungarian matching).
    result = matcher(outputs, targets)

    # Sanity: shapes / basic invariants.
    assert result["per_prop_gt_inds"].shape == (B, NPROP)
    assert result["proposal_matched_mask"].shape == (B, NPROP)
    for b in range(B):
        assert int(result["proposal_matched_mask"][b].sum()) == int(nactual_gt[b])

    print("KERNEL_OK")
</pallas_src>

<mosaic_0001>
module attributes {stable_mosaic.version = 11 : i64} {
  func.func @_cost_kernel(%arg0: i32, %arg1: memref<8x512xf32, #tpu.memory_space<vmem>>, %arg2: memref<8x512xf32, #tpu.memory_space<vmem>>, %arg3: memref<8x512xf32, #tpu.memory_space<vmem>>) attributes {dimension_semantics = [#tpu.dimension_semantics<parallel>], iteration_bounds = array<i64: 1>, scalar_prefetch = 0 : i64, scratch_operands = 0 : i64, tpu.core_type = #tpu.core_type<tc>, window_params = [{transform_indices = @transform_0, window_bounds = array<i64: 8, 512>}, {transform_indices = @transform_1, window_bounds = array<i64: 8, 512>}, {transform_indices = @transform_2, window_bounds = array<i64: 8, 512>}]} {
    %c0 = arith.constant 0 : index
    %c0_0 = arith.constant 0 : index
    %0 = vector.load %arg1[%c0, %c0_0] : memref<8x512xf32, #tpu.memory_space<vmem>>, vector<8x512xf32>
    %c0_1 = arith.constant 0 : index
    %c0_2 = arith.constant 0 : index
    %1 = vector.load %arg2[%c0_1, %c0_2] : memref<8x512xf32, #tpu.memory_space<vmem>>, vector<8x512xf32>
    %cst = arith.constant 5.000000e-01 : f32
    %2 = vector.broadcast %cst : f32 to vector<8x512xf32>
    %3 = arith.mulf %2, %0 : vector<8x512xf32>
    %cst_3 = arith.constant 2.000000e+00 : f32
    %4 = vector.broadcast %cst_3 : f32 to vector<8x512xf32>
    %5 = arith.mulf %4, %1 : vector<8x512xf32>
    %6 = arith.subf %3, %5 : vector<8x512xf32>
    %c0_4 = arith.constant 0 : index
    %c0_5 = arith.constant 0 : index
    %7 = vector.load %arg3[%c0_4, %c0_5] : memref<8x512xf32, #tpu.memory_space<vmem>>, vector<8x512xf32>
    tpu.vector_store %arg3[%c0_4, %c0_5], %6 {strides = array<i32>} : memref<8x512xf32, #tpu.memory_space<vmem>>, vector<8x512xf32>,
    return
  }
  func.func @transform_0(%arg0: i32) -> (i32, i32) {
    %c0_i32 = arith.constant 0 : i32
    %c0_i32_0 = arith.constant 0 : i32
    return %arg0, %c0_i32 : i32, i32
  }
  func.func @transform_1(%arg0: i32) -> (i32, i32) {
    %c0_i32 = arith.constant 0 : i32
    %c0_i32_0 = arith.constant 0 : i32
    return %arg0, %c0_i32 : i32, i32
  }
  func.func @transform_2(%arg0: i32) -> (i32, i32) {
    %c0_i32 = arith.constant 0 : i32
    %c0_i32_0 = arith.constant 0 : i32
    return %arg0, %c0_i32 : i32, i32
  }
}

</mosaic_0001>

<bundles_post_ra>
// kernel: cost_matrix.1
= control target key start
LH: loop header
LB: loop body
LE: loop exit
PB: predicated region body
PF: predicated region fallthrough
CT: control target
= control target key end

     0   :  { %s90_s0 = inlined_call_operand.vmem [shape: f32[8,512], index: 0, kind: input, shape index: {}]   ;;  %s91_s1 = inlined_call_operand.vmem [shape: f32[8,512], index: 1, kind: input, shape index: {}]   ;;  %s92_s2 = inlined_call_operand.vmem [shape: f32[8,512], index: 2, kind: output, shape index: {}]  }
   0x1   :  { %v11_v0 = vld [vmem:[%s90_s0] sm:$0xff]  ;;  %v12_v2 = vld [vmem:[%s90_s0 + $0x8] sm:$0xff]  ;;  %v13_v7 = vld [vmem:[%s90_s0 + $0x10] sm:$0xff] }
   0x2   :  { %v15_v1 = vld [vmem:[%s91_s1] sm:$0xff]  ;;  %v19_v3 = vmul.f32 0.5, %v11_v0  ;;  %v16_v5 = vld [vmem:[%s91_s1 + $0x8] sm:$0xff]  ;;  %v20_v6 = vmul.f32 0.5, %v12_v2  ;;  %v17_v8 = vld [vmem:[%s91_s1 + $0x10] sm:$0xff]  ;;  %v21_v10 = vmul.f32 0.5, %v13_v7 }
   0x3   :  { %v23_v4 = vmul.f32 2.0, %v15_v1  ;;  %v24_v9 = vmul.f32 2.0, %v16_v5  ;;  %v25_v11 = vmul.f32 2.0, %v17_v8  ;;  %v14_v12 = vld [vmem:[%s90_s0 + $0x18] sm:$0xff] }
   0x4   :  { %v18_v13 = vld [vmem:[%s91_s1 + $0x18] sm:$0xff]  ;;  %v22_v15 = vmul.f32 0.5, %v14_v12 }
   0x5   :  { %v27_v14 = vsub.f32 %v19_v3, %v23_v4  ;;  %v26_v16 = vmul.f32 2.0, %v18_v13  ;;  %v28_v17 = vsub.f32 %v20_v6, %v24_v9  ;;  %v29_v18 = vsub.f32 %v21_v10, %v25_v11 }
   0x7   :  { %31 = vst [vmem:[%s92_s2] sm:$0xff] %v27_v14  ;;  %v30_v19 = vsub.f32 %v22_v15, %v26_v16 }
   0x8   :  { %32 = vst [vmem:[%s92_s2 + $0x8] sm:$0xff] %v28_v17 }
   0x9   :  { %33 = vst [vmem:[%s92_s2 + $0x10] sm:$0xff] %v29_v18 }
   0xa   :  { %34 = vst [vmem:[%s92_s2 + $0x18] sm:$0xff] %v30_v19 }

</bundles_post_ra>
